<compile_context>
chip_gen: v7x
topology: tpu7x:2x2x1
jax: 0.10.0
libtpu: 0.0.40
codegen_flags: <defaults>
</compile_context>

<pallas_src>
import functools

import jax
import jax.numpy as jnp
from jax.experimental import pallas as pl
from jax.experimental.pallas import tpu as pltpu


def _sep_conv_kernel(xp_ref, wt_ref, o_ref, *, ksize, dilation, th, wout):
    """One grid step: a TH-row output strip for one batch element.

    xp_ref: (1, Hp, Wp, C)     padded input for batch n, channels-last
    wt_ref: (k*k, C, O)        pre-combined per-tap depthwise*pointwise weights
    o_ref : (1, O, TH*Wout)    output strip, channels-first, flattened H*W
    """
    h_tile = pl.program_id(1)
    n_out = o_ref.shape[1]                     # O
    row0 = h_tile * th                         # first output row of this strip

    # f32 accumulator for the strip (small: TH*Wout x O), kept in registers.
    acc = jnp.zeros((th * wout, n_out), jnp.float32)

    # k*k taps, each one MXU matmul with M = TH*Wout.
    for kh in range(ksize):
        for kw in range(ksize):
            tap = kh * ksize + kw
            w0 = kw * dilation                 # static W offset
            x_tap = xp_ref[0, pl.ds(row0 + kh * dilation, th),
                           w0:w0 + wout, :]    # (TH, Wout, C)
            # (TH, Wout, C) -> (TH*Wout, C): lane dim (C) unchanged, pure
            # sublane merge — cheap; feeds a single big-M matmul per tap.
            x_flat = x_tap.reshape(th * wout, x_tap.shape[-1])
            acc = acc + jnp.dot(
                x_flat, wt_ref[tap], preferred_element_type=jnp.float32
            )

    # Single lane-dense block store: (O, TH*Wout), last dim multiple of 128.
    o_ref[0, :, :] = acc.T.astype(o_ref.dtype)


def _pick_row_tile(hout, wout):
    """Pick a row tile: small (keeps VMEM bounded, gives several parallel grid
    steps) with a lane-aligned flattened strip (TH*Wout % 128 == 0)."""
    for th in (8, 16, 4, 32, 2, 64, 1):
        if th <= hout and hout % th == 0 and (th * wout) % 128 == 0:
            return th
    return hout  # fallback: one full-height strip (block == full array dim)


def conv2d_separable(x_nchw, w_depth, w_point, *, padding=0, dilation=1):
    """Forward of Conv2d_Seperable (both convs bias=False, stride=1).

    x_nchw : (N, C, H, W)
    w_depth: (C, 1, k, k)   depthwise weight (groups=C)
    w_point: (O, C, 1, 1)   pointwise 1x1 weight
    returns: (N, O, Hout, Wout) NCHW
    """
    N, C, H, W = x_nchw.shape
    O = w_point.shape[0]
    k = w_depth.shape[-1]
    Hout = H + 2 * padding - dilation * (k - 1)
    Wout = W + 2 * padding - dilation * (k - 1)

    # TODO(synk): fold the NCHW->NHWC transpose + zero padding into the kernel
    # (manual halo DMA + edge masking) to remove these input-side HBM round
    # trips at production sizes; kept in the wrapper here for clarity.
    x_nhwc = jnp.transpose(x_nchw, (0, 2, 3, 1))
    xp = jnp.pad(x_nhwc, ((0, 0), (padding, padding), (padding, padding), (0, 0)))
    Hp, Wp = xp.shape[1], xp.shape[2]

    # Pre-combined per-tap weights: W_tap[kh,kw,c,o] = wd[c,kh,kw] * wp[o,c].
    wd_kkc = jnp.transpose(w_depth.reshape(C, k, k), (1, 2, 0))        # (k,k,C)
    wp_co = w_point.reshape(O, C).T                                    # (C,O)
    w_tap = (wd_kkc.astype(jnp.float32)[..., None]
             * wp_co.astype(jnp.float32)[None, None])                  # (k,k,C,O)
    # Keep matmul operands in the input dtype (bf16 stays bf16 on v6e/v7x);
    # accumulation is forced to f32 inside the kernel.
    w_tap = w_tap.reshape(k * k, C, O).astype(x_nchw.dtype)

    th = _pick_row_tile(Hout, Wout)
    n_h = Hout // th

    kernel = functools.partial(
        _sep_conv_kernel, ksize=k, dilation=dilation, th=th, wout=Wout
    )

    out_flat = pl.pallas_call(
        kernel,
        out_shape=jax.ShapeDtypeStruct((N, O, Hout * Wout), x_nchw.dtype),
        grid_spec=pltpu.PrefetchScalarGridSpec(
            num_scalar_prefetch=0,
            grid=(N, n_h),
            in_specs=[
                # Padded image for batch n; the block index is independent of
                # the row-strip axis (innermost), so it is fetched once per n
                # and re-used across strips.
                pl.BlockSpec((1, Hp, Wp, C), lambda n, h: (n, 0, 0, 0)),
                pl.BlockSpec((k * k, C, O), lambda n, h: (0, 0, 0)),
            ],
            out_specs=pl.BlockSpec((1, O, th * Wout), lambda n, h: (n, 0, h)),
        ),
        compiler_params=pltpu.CompilerParams(
            dimension_semantics=("parallel", "parallel"),
            vmem_limit_bytes=32 * 1024 * 1024,
        ),
    )(xp, w_tap)

    # (N, O, Hout*Wout) -> (N, O, Hout, Wout): trailing-dim split, no transpose.
    return out_flat.reshape(N, O, Hout, Wout)


def _reference(x, w_depth, w_point, *, padding, dilation):
    C = x.shape[1]
    dn = ("NCHW", "OIHW", "NCHW")
    dw = jax.lax.conv_general_dilated(
        x, w_depth, window_strides=(1, 1),
        padding=[(padding, padding), (padding, padding)],
        rhs_dilation=(dilation, dilation),
        dimension_numbers=dn, feature_group_count=C,
    )
    return jax.lax.conv_general_dilated(
        dw, w_point, window_strides=(1, 1), padding=[(0, 0), (0, 0)],
        dimension_numbers=dn,
    )


if __name__ == "__main__":
    # Conv2d_Seperable(inC=4, outC=8, ksize=3, padding=1, dilation=1)
    N, C, H, W = 2, 4, 16, 16
    O, k, pad, dil = 8, 3, 1, 1

    key = jax.random.PRNGKey(0)
    kx, kd, kp = jax.random.split(key, 3)
    x = jax.random.normal(kx, (N, C, H, W), dtype=jnp.float32)
    # Deterministic synthetic parameters (same shapes as the nn.Conv2d weights,
    # both convs bias=False as in the module).
    w_depth = jax.random.normal(kd, (C, 1, k, k), dtype=jnp.float32) * 0.1
    w_point = jax.random.normal(kp, (O, C, 1, 1), dtype=jnp.float32) * 0.1

    out = conv2d_separable(x, w_depth, w_point, padding=pad, dilation=dil)
    out = jax.block_until_ready(out)

    ref = _reference(x, w_depth, w_point, padding=pad, dilation=dil)
    assert out.shape == ref.shape == (N, O, H, W), (out.shape, ref.shape)
    max_err = float(jnp.max(jnp.abs(out - ref)))
    assert jnp.allclose(out, ref, atol=1e-4, rtol=1e-4), max_err

    print("KERNEL_OK")
</pallas_src>

<mosaic_0001>
module attributes {stable_mosaic.version = 11 : i64} {
  func.func @_sep_conv_kernel(%arg0: i32, %arg1: i32, %arg2: memref<1x18x18x4xf32, #tpu.memory_space<vmem>>, %arg3: memref<9x4x8xf32, #tpu.memory_space<vmem>>, %arg4: memref<1x8x128xf32, #tpu.memory_space<vmem>>) attributes {dimension_semantics = [#tpu.dimension_semantics<parallel>, #tpu.dimension_semantics<parallel>], iteration_bounds = array<i64: 2, 2>, scalar_prefetch = 0 : i64, scratch_operands = 0 : i64, tpu.core_type = #tpu.core_type<tc>, window_params = [{transform_indices = @transform_0, window_bounds = array<i64: 1, 18, 18, 4>}, {pipeline_mode = #tpu.pipeline_mode<synchronous>, transform_indices = @transform_1, window_bounds = array<i64: 9, 4, 8>}, {transform_indices = @transform_2, window_bounds = array<i64: 1, 8, 128>}]} {
    %c8_i32 = arith.constant 8 : i32
    %0 = arith.muli %arg1, %c8_i32 : i32
    %cst = arith.constant 0.000000e+00 : f32
    %1 = vector.broadcast %cst : f32 to vector<128x8xf32>
    %c0_i32 = arith.constant 0 : i32
    %2 = arith.addi %0, %c0_i32 : i32
    %c0 = arith.constant 0 : index
    %3 = arith.index_cast %2 : i32 to index
    %c0_0 = arith.constant 0 : index
    %c0_1 = arith.constant 0 : index
    %4 = vector.load %arg2[%c0, %3, %c0_0, %c0_1] : memref<1x18x18x4xf32, #tpu.memory_space<vmem>>, vector<1x8x16x4xf32>
    %5 = vector.shape_cast %4 : vector<1x8x16x4xf32> to vector<8x16x4xf32>
    %6 = vector.shape_cast %5 : vector<8x16x4xf32> to vector<128x4xf32>
    %c0_2 = arith.constant 0 : index
    %c0_3 = arith.constant 0 : index
    %c0_4 = arith.constant 0 : index
    %7 = vector.load %arg3[%c0_2, %c0_3, %c0_4] : memref<9x4x8xf32, #tpu.memory_space<vmem>>, vector<1x4x8xf32>
    %8 = vector.shape_cast %7 : vector<1x4x8xf32> to vector<4x8xf32>
    %cst_5 = arith.constant dense<0.000000e+00> : vector<128x8xf32>
    %9 = tpu.matmul %6, %8, %cst_5 {dimension_numbers = #tpu.dot_dimension_numbers<[1], [0], [0], [1], [0, 0, 1, 1], [], []>} : vector<128x4xf32>, vector<4x8xf32>, vector<128x8xf32> -> vector<128x8xf32>
    %10 = arith.addf %1, %9 : vector<128x8xf32>
    %c0_i32_6 = arith.constant 0 : i32
    %11 = arith.addi %0, %c0_i32_6 : i32
    %c0_7 = arith.constant 0 : index
    %12 = arith.index_cast %11 : i32 to index
    %c1 = arith.constant 1 : index
    %c0_8 = arith.constant 0 : index
    %13 = vector.load %arg2[%c0_7, %12, %c1, %c0_8] : memref<1x18x18x4xf32, #tpu.memory_space<vmem>>, vector<1x8x16x4xf32>
    %14 = vector.shape_cast %13 : vector<1x8x16x4xf32> to vector<8x16x4xf32>
    %15 = vector.shape_cast %14 : vector<8x16x4xf32> to vector<128x4xf32>
    %c1_9 = arith.constant 1 : index
    %c0_10 = arith.constant 0 : index
    %c0_11 = arith.constant 0 : index
    %16 = vector.load %arg3[%c1_9, %c0_10, %c0_11] : memref<9x4x8xf32, #tpu.memory_space<vmem>>, vector<1x4x8xf32>
    %17 = vector.shape_cast %16 : vector<1x4x8xf32> to vector<4x8xf32>
    %cst_12 = arith.constant dense<0.000000e+00> : vector<128x8xf32>
    %18 = tpu.matmul %15, %17, %cst_12 {dimension_numbers = #tpu.dot_dimension_numbers<[1], [0], [0], [1], [0, 0, 1, 1], [], []>} : vector<128x4xf32>, vector<4x8xf32>, vector<128x8xf32> -> vector<128x8xf32>
    %19 = arith.addf %10, %18 : vector<128x8xf32>
    %c0_i32_13 = arith.constant 0 : i32
    %20 = arith.addi %0, %c0_i32_13 : i32
    %c0_14 = arith.constant 0 : index
    %21 = arith.index_cast %20 : i32 to index
    %c2 = arith.constant 2 : index
    %c0_15 = arith.constant 0 : index
    %22 = vector.load %arg2[%c0_14, %21, %c2, %c0_15] : memref<1x18x18x4xf32, #tpu.memory_space<vmem>>, vector<1x8x16x4xf32>
    %23 = vector.shape_cast %22 : vector<1x8x16x4xf32> to vector<8x16x4xf32>
    %24 = vector.shape_cast %23 : vector<8x16x4xf32> to vector<128x4xf32>
    %c2_16 = arith.constant 2 : index
    %c0_17 = arith.constant 0 : index
    %c0_18 = arith.constant 0 : index
    %25 = vector.load %arg3[%c2_16, %c0_17, %c0_18] : memref<9x4x8xf32, #tpu.memory_space<vmem>>, vector<1x4x8xf32>
    %26 = vector.shape_cast %25 : vector<1x4x8xf32> to vector<4x8xf32>
    %cst_19 = arith.constant dense<0.000000e+00> : vector<128x8xf32>
    %27 = tpu.matmul %24, %26, %cst_19 {dimension_numbers = #tpu.dot_dimension_numbers<[1], [0], [0], [1], [0, 0, 1, 1], [], []>} : vector<128x4xf32>, vector<4x8xf32>, vector<128x8xf32> -> vector<128x8xf32>
    %28 = arith.addf %19, %27 : vector<128x8xf32>
    %c1_i32 = arith.constant 1 : i32
    %29 = arith.addi %0, %c1_i32 : i32
    %c0_20 = arith.constant 0 : index
    %30 = arith.index_cast %29 : i32 to index
    %c0_21 = arith.constant 0 : index
    %c0_22 = arith.constant 0 : index
    %31 = vector.load %arg2[%c0_20, %30, %c0_21, %c0_22] : memref<1x18x18x4xf32, #tpu.memory_space<vmem>>, vector<1x8x16x4xf32>
    %32 = vector.shape_cast %31 : vector<1x8x16x4xf32> to vector<8x16x4xf32>
    %33 = vector.shape_cast %32 : vector<8x16x4xf32> to vector<128x4xf32>
    %c3 = arith.constant 3 : index
    %c0_23 = arith.constant 0 : index
    %c0_24 = arith.constant 0 : index
    %34 = vector.load %arg3[%c3, %c0_23, %c0_24] : memref<9x4x8xf32, #tpu.memory_space<vmem>>, vector<1x4x8xf32>
    %35 = vector.shape_cast %34 : vector<1x4x8xf32> to vector<4x8xf32>
    %cst_25 = arith.constant dense<0.000000e+00> : vector<128x8xf32>
    %36 = tpu.matmul %33, %35, %cst_25 {dimension_numbers = #tpu.dot_dimension_numbers<[1], [0], [0], [1], [0, 0, 1, 1], [], []>} : vector<128x4xf32>, vector<4x8xf32>, vector<128x8xf32> -> vector<128x8xf32>
    %37 = arith.addf %28, %36 : vector<128x8xf32>
    %c1_i32_26 = arith.constant 1 : i32
    %38 = arith.addi %0, %c1_i32_26 : i32
    %c0_27 = arith.constant 0 : index
    %39 = arith.index_cast %38 : i32 to index
    %c1_28 = arith.constant 1 : index
    %c0_29 = arith.constant 0 : index
    %40 = vector.load %arg2[%c0_27, %39, %c1_28, %c0_29] : memref<1x18x18x4xf32, #tpu.memory_space<vmem>>, vector<1x8x16x4xf32>
    %41 = vector.shape_cast %40 : vector<1x8x16x4xf32> to vector<8x16x4xf32>
    %42 = vector.shape_cast %41 : vector<8x16x4xf32> to vector<128x4xf32>
    %c4 = arith.constant 4 : index
    %c0_30 = arith.constant 0 : index
    %c0_31 = arith.constant 0 : index
    %43 = vector.load %arg3[%c4, %c0_30, %c0_31] : memref<9x4x8xf32, #tpu.memory_space<vmem>>, vector<1x4x8xf32>
    %44 = vector.shape_cast %43 : vector<1x4x8xf32> to vector<4x8xf32>
    %cst_32 = arith.constant dense<0.000000e+00> : vector<128x8xf32>
    %45 = tpu.matmul %42, %44, %cst_32 {dimension_numbers = #tpu.dot_dimension_numbers<[1], [0], [0], [1], [0, 0, 1, 1], [], []>} : vector<128x4xf32>, vector<4x8xf32>, vector<128x8xf32> -> vector<128x8xf32>
    %46 = arith.addf %37, %45 : vector<128x8xf32>
    %c1_i32_33 = arith.constant 1 : i32
    %47 = arith.addi %0, %c1_i32_33 : i32
    %c0_34 = arith.constant 0 : index
    %48 = arith.index_cast %47 : i32 to index
    %c2_35 = arith.constant 2 : index
    %c0_36 = arith.constant 0 : index
    %49 = vector.load %arg2[%c0_34, %48, %c2_35, %c0_36] : memref<1x18x18x4xf32, #tpu.memory_space<vmem>>, vector<1x8x16x4xf32>
    %50 = vector.shape_cast %49 : vector<1x8x16x4xf32> to vector<8x16x4xf32>
    %51 = vector.shape_cast %50 : vector<8x16x4xf32> to vector<128x4xf32>
    %c5 = arith.constant 5 : index
    %c0_37 = arith.constant 0 : index
    %c0_38 = arith.constant 0 : index
    %52 = vector.load %arg3[%c5, %c0_37, %c0_38] : memref<9x4x8xf32, #tpu.memory_space<vmem>>, vector<1x4x8xf32>
    %53 = vector.shape_cast %52 : vector<1x4x8xf32> to vector<4x8xf32>
    %cst_39 = arith.constant dense<0.000000e+00> : vector<128x8xf32>
    %54 = tpu.matmul %51, %53, %cst_39 {dimension_numbers = #tpu.dot_dimension_numbers<[1], [0], [0], [1], [0, 0, 1, 1], [], []>} : vector<128x4xf32>, vector<4x8xf32>, vector<128x8xf32> -> vector<128x8xf32>
    %55 = arith.addf %46, %54 : vector<128x8xf32>
    %c2_i32 = arith.constant 2 : i32
    %56 = arith.addi %0, %c2_i32 : i32
    %c0_40 = arith.constant 0 : index
    %57 = arith.index_cast %56 : i32 to index
    %c0_41 = arith.constant 0 : index
    %c0_42 = arith.constant 0 : index
    %58 = vector.load %arg2[%c0_40, %57, %c0_41, %c0_42] : memref<1x18x18x4xf32, #tpu.memory_space<vmem>>, vector<1x8x16x4xf32>
    %59 = vector.shape_cast %58 : vector<1x8x16x4xf32> to vector<8x16x4xf32>
    %60 = vector.shape_cast %59 : vector<8x16x4xf32> to vector<128x4xf32>
    %c6 = arith.constant 6 : index
    %c0_43 = arith.constant 0 : index
    %c0_44 = arith.constant 0 : index
    %61 = vector.load %arg3[%c6, %c0_43, %c0_44] : memref<9x4x8xf32, #tpu.memory_space<vmem>>, vector<1x4x8xf32>
    %62 = vector.shape_cast %61 : vector<1x4x8xf32> to vector<4x8xf32>
    %cst_45 = arith.constant dense<0.000000e+00> : vector<128x8xf32>
    %63 = tpu.matmul %60, %62, %cst_45 {dimension_numbers = #tpu.dot_dimension_numbers<[1], [0], [0], [1], [0, 0, 1, 1], [], []>} : vector<128x4xf32>, vector<4x8xf32>, vector<128x8xf32> -> vector<128x8xf32>
    %64 = arith.addf %55, %63 : vector<128x8xf32>
    %c2_i32_46 = arith.constant 2 : i32
    %65 = arith.addi %0, %c2_i32_46 : i32
    %c0_47 = arith.constant 0 : index
    %66 = arith.index_cast %65 : i32 to index
    %c1_48 = arith.constant 1 : index
    %c0_49 = arith.constant 0 : index
    %67 = vector.load %arg2[%c0_47, %66, %c1_48, %c0_49] : memref<1x18x18x4xf32, #tpu.memory_space<vmem>>, vector<1x8x16x4xf32>
    %68 = vector.shape_cast %67 : vector<1x8x16x4xf32> to vector<8x16x4xf32>
    %69 = vector.shape_cast %68 : vector<8x16x4xf32> to vector<128x4xf32>
    %c7 = arith.constant 7 : index
    %c0_50 = arith.constant 0 : index
    %c0_51 = arith.constant 0 : index
    %70 = vector.load %arg3[%c7, %c0_50, %c0_51] : memref<9x4x8xf32, #tpu.memory_space<vmem>>, vector<1x4x8xf32>
    %71 = vector.shape_cast %70 : vector<1x4x8xf32> to vector<4x8xf32>
    %cst_52 = arith.constant dense<0.000000e+00> : vector<128x8xf32>
    %72 = tpu.matmul %69, %71, %cst_52 {dimension_numbers = #tpu.dot_dimension_numbers<[1], [0], [0], [1], [0, 0, 1, 1], [], []>} : vector<128x4xf32>, vector<4x8xf32>, vector<128x8xf32> -> vector<128x8xf32>
    %73 = arith.addf %64, %72 : vector<128x8xf32>
    %c2_i32_53 = arith.constant 2 : i32
    %74 = arith.addi %0, %c2_i32_53 : i32
    %c0_54 = arith.constant 0 : index
    %75 = arith.index_cast %74 : i32 to index
    %c2_55 = arith.constant 2 : index
    %c0_56 = arith.constant 0 : index
    %76 = vector.load %arg2[%c0_54, %75, %c2_55, %c0_56] : memref<1x18x18x4xf32, #tpu.memory_space<vmem>>, vector<1x8x16x4xf32>
    %77 = vector.shape_cast %76 : vector<1x8x16x4xf32> to vector<8x16x4xf32>
    %78 = vector.shape_cast %77 : vector<8x16x4xf32> to vector<128x4xf32>
    %c8 = arith.constant 8 : index
    %c0_57 = arith.constant 0 : index
    %c0_58 = arith.constant 0 : index
    %79 = vector.load %arg3[%c8, %c0_57, %c0_58] : memref<9x4x8xf32, #tpu.memory_space<vmem>>, vector<1x4x8xf32>
    %80 = vector.shape_cast %79 : vector<1x4x8xf32> to vector<4x8xf32>
    %cst_59 = arith.constant dense<0.000000e+00> : vector<128x8xf32>
    %81 = tpu.matmul %78, %80, %cst_59 {dimension_numbers = #tpu.dot_dimension_numbers<[1], [0], [0], [1], [0, 0, 1, 1], [], []>} : vector<128x4xf32>, vector<4x8xf32>, vector<128x8xf32> -> vector<128x8xf32>
    %82 = arith.addf %73, %81 : vector<128x8xf32>
    %83 = tpu.transpose %82, [1, 0] : vector<128x8xf32> -> vector<8x128xf32>
    %c0_60 = arith.constant 0 : index
    %c0_61 = arith.constant 0 : index
    %c0_62 = arith.constant 0 : index
    %84 = vector.load %arg4[%c0_60, %c0_61, %c0_62] : memref<1x8x128xf32, #tpu.memory_space<vmem>>, vector<1x8x128xf32>
    %85 = vector.shape_cast %84 : vector<1x8x128xf32> to vector<8x128xf32>
    %86 = vector.shape_cast %83 : vector<8x128xf32> to vector<1x8x128xf32>
    tpu.vector_store %arg4[%c0_60, %c0_61, %c0_62], %86 {strides = array<i32>} : memref<1x8x128xf32, #tpu.memory_space<vmem>>, vector<1x8x128xf32>,
    return
  }
  func.func @transform_0(%arg0: i32, %arg1: i32) -> (i32, i32, i32, i32) {
    %c0_i32 = arith.constant 0 : i32
    %c0_i32_0 = arith.constant 0 : i32
    %c0_i32_1 = arith.constant 0 : i32
    %c0_i32_2 = arith.constant 0 : i32
    return %arg0, %c0_i32, %c0_i32_0, %c0_i32_1 : i32, i32, i32, i32
  }
  func.func @transform_1(%arg0: i32, %arg1: i32) -> (i32, i32, i32) {
    %c0_i32 = arith.constant 0 : i32
    %c0_i32_0 = arith.constant 0 : i32
    %c0_i32_1 = arith.constant 0 : i32
    %c0_i32_2 = arith.constant 0 : i32
    return %c0_i32, %c0_i32_0, %c0_i32_1 : i32, i32, i32
  }
  func.func @transform_2(%arg0: i32, %arg1: i32) -> (i32, i32, i32) {
    %c0_i32 = arith.constant 0 : i32
    %c0_i32_0 = arith.constant 0 : i32
    return %arg0, %c0_i32, %arg1 : i32, i32, i32
  }
}

</mosaic_0001>

<bundles_post_ra>
// kernel: tpu_custom_call.1
= control target key start
LH: loop header
LB: loop body
LE: loop exit
PB: predicated region body
PF: predicated region fallthrough
CT: control target
= control target key end

     0   :  { %7 = vsyncpa [#allocation3], 0  ;;  %s3922_s0 = inlined_call_operand.vmem [shape: f32[2,18,18,4], index: 0, kind: input, shape index: {}]   ;;  %s3923_s1 = inlined_call_operand.vmem [shape: f32[9,4,8], index: 1, kind: input, shape index: {}]   ;;  %s3924_s2 = inlined_call_operand.hbm [shape: f32[2,8,256], index: 2, kind: output, shape index: {}]  }
   0x1   :  { %9 = vsyncpa [#allocation3 + $0x1], 0  ;;  %s3311_s9 = smov 0   ;;  %s3313_s10 = smov 0  }
   0x2   :  { %s3315_s11 = smov 0   ;;  %s3317_s12 = smov 0  }
   0x3   :  { %s3319_s13 = smov 0   ;;  %s3321_s14 = smov 0  }
   0x4   :  { %s3323_s15 = smov 0   ;;  %s3325_s16 = smov 0  }
   0x5 LB: > { %s2335_s17 = sadd.s32 4294967295, %s3293_s16   ;;  %s2336_s18 = sadd.s32 4294967294, %s3293_s16   ;;  %s3293_s16 = sphi %s3325_s16, %s15_s16   ;;  %s3289_s15 = sphi %s3323_s15, %s3933_s15   ;;  %s3285_s14 = sphi %s3321_s14, %s3932_s14   ;;  %s3281_s13 = sphi %s3319_s13, %s3931_s13   ;;  %s3277_s12 = sphi %s3317_s12, %s3930_s12   ;;  %s3273_s11 = sphi %s3315_s11, %s3929_s11   ;;  %s3269_s10 = sphi %s3313_s10, %s3928_s10   ;;  %s3265_s9 = sphi %s3311_s9, %s3927_s9  }
   0x6   : > { %s24_s19 = sadd.s32 1, %s3285_s14  ;;  %s27_s20 = sadd.s32 1, %s3289_s15 }
   0x7   : > { %p25_p0 = scmp.ge.s32.totalorder %s24_s19, 2  ;;  %p93_p1 = scmp.ne.s32.totalorder %s3273_s11, %s3269_s10 }
   0x8   : > { %p94_p2 = scmp.eq.s32.totalorder %s2335_s17, 3  ;;  %p99_p5 = scmp.ne.s32.totalorder %s3269_s10, %s3265_s9 }
   0x9   : > { %s3935_s19 = smov (%p25_p0, %s24_s19), 0  ;;  %s3937_s20 = smov (!%p25_p0, %s27_s20), %s3289_s15 }
   0xa   : > { %s79_s21 = ssub.s32 %s3285_s14, %s3935_s19  ;;  %p3362_p3 = por %p94_p2, %p93_p1 }
   0xb   : > { %p29_p4 = scmp.ge.s32.totalorder %s3937_s20, 2  ;;  %p100_p6 = scmp.eq.s32.totalorder %s2336_s18, 3 }
   0xc   : > { %p2339_p7 = scmp.ge.s32.totalorder %s3293_s16, 1  ;;  %p129_p9 = scmp.lt.s32.totalorder %s3293_s16, 5 }
   0xd   : > { %s3939_s20 = smov (%p29_p4, %s3937_s20), 0  ;;  %p3371_p8 = por %p100_p6, %p99_p5 }
   0xe   : > { %s78_s24 = ssub.s32 %s3289_s15, %s3939_s20  ;;  %s83_s25 = sadd.s32 1, %s3273_s11 }
   0xf   : > { %s80_s26 = sor.u32 %s79_s21, %s78_s24  ;;  %p130_p10 = pnand %p2339_p7, %p129_p9 }
  0x10   : > { %p81_p11 = scmp.eq.s32.totalorder %s80_s26, 0  ;;  %vm243_vm0 = vcmask (!%p130_p10), 1043456   ;;  %v3385_v0 = vld [vmem:[%s3923_s1 + $0x10] sm:$0xf] (!%p130_p10)  ;;  %v2344_v1 = vld [vmem:[%s3923_s1 + $0x4] sm:$0xf] (!%p130_p10) }
  0x11   : > { %133 = sbr.rel (%p130_p10) target bundleno = 502 (0x1f6), region = 28  ;;  %p151_p12 = scmp.lt.s32.totalorder (!%p130_p10), %s3281_s13, 1  ;;  %2867 = vmatprep.subr.msk.mxu0 (!%p130_p10), %vm243_vm0, %v3385_v0  ;;  %2763 = vmatprep.subr.msk.mxu1 (!%p130_p10), %vm243_vm0, %v2344_v1  ;;  %v2483_v2 = vld [vmem:[%s3923_s1 + $0x14] sm:$0xf] (!%p130_p10)  ;;  %v175_v3 = vld [vmem:[%s3923_s1] sm:$0xf] (!%p130_p10) }
  0x12   : > { %s3380_s27 = scalar_select %p81_p11, %s3273_s11, %s83_s25  }
  0x13   : > { %2868 = vmatpush3.msk.msra.mxu0 (!%p130_p10), %vm243_vm0, %v3385_v0  ;;  %2764 = vmatpush3.msk.msra.mxu1 (!%p130_p10), %vm243_vm0, %v2344_v1  ;;  %s2343_s17 = smul.u32 (!%p130_p10), 192, %s3277_s12  ;;  %vm194_vm1 = vcmask (!%p130_p10), 31744   ;;  %v2519_v9 = vld [vmem:[%s3923_s1 + $0x18] sm:$0xf] (!%p130_p10)  ;;  %v3441_v12 = vld [vmem:[%s3923_s1 + $0x8] sm:$0xf] (!%p130_p10) }
  0x14   : > { %2893 = vmatprep.subr.msk.mxu0 (!%p130_p10), %vm243_vm0, %v2483_v2  ;;  %2789 = vmatprep.subr.msk.mxu1 (!%p130_p10), %vm243_vm0, %v175_v3  ;;  %v3492_v20 = vld [vmem:[%s3923_s1 + $0x1c] sm:$0xf] (!%p130_p10)  ;;  %v2415_v37 = vld [vmem:[%s3923_s1 + $0xc] sm:$0xf] (!%p130_p10)  ;;  %v2587_v51 = vld [vmem:[%s3923_s1 + $0x20] sm:$0xf] (!%p130_p10) }
  0x15   : > { %s2606_s24 = sshll.u32 (!%p130_p10), %s3281_s13, 1 }
  0x18   : > { %s152_s8 = scalar_select %p151_p12, %s3281_s13, 1 }
  0x1a   : > { %s3127_s18 = smul.u32 432, %s152_s8 }
  0x1c   : > { %s155_s25 = scalar_lea.vmem %s3922_s0, %s3127_s18  ;;  %s148_s18 = sand.u32 1, %s3269_s10  }
  0x1d   : > { %s3410_s26 = scalar_lea.vmem %s155_s25, %s2343_s17  ;;  %s2340_s21 = sshll.u32 %s148_s18, 3 }
  0x1e   : > { %v176_v4 = vld [vmem:[%s3410_s26 + $0x1] sm:$0xff]  ;;  %v2433_v5 = vld [vmem:[%s3410_s26 + $0x19] sm:$0xff]  ;;  %v177_v6 = vld [vmem:[%s3410_s26 + $0x9] sm:$0xff]  ;;  %s2249_s25 = sadd.s32 %s3277_s12, %s2606_s24  ;;  %s2238_s5 = scalar_lea.sflag [#allocation3], %s148_s18 }
  0x1f   : > { %2765 = vmatprep.mubr.msk.f32.mxu1 %vm194_vm1, %v176_v4  ;;  %2869 = vmatprep.mubr.msk.f32.mxu0 %vm194_vm1, %v2433_v5  ;;  %v2434_v7 = vld [vmem:[%s3410_s26 + $0x21] sm:$0xff]  ;;  %v3419_v8 = vld [vmem:[%s3410_s26 + $0x31] sm:$0xff]  ;;  %v3429_v10 = vld [vmem:[%s3410_s26 + $0x39] sm:$0xff]  ;;  %s2607_s29 = sshll.u32 %s2249_s25, 7  ;;  %s3295_s12 = smov [#allocation2]  }
  0x20   : > { %2766 = vmatmul.mubr.msk.f32.vlgmr.msra.gmra.mrb[0].mxu1 %vm194_vm1, %v177_v6  ;;  %2870 = vmatmul.mubr.msk.f32.vlgmr.msra.gmra.mrb[0].mxu0 %vm194_vm1, %v2434_v7  ;;  %v3434_v11 = vld [vmem:[%s3410_s26 + $0x49] sm:$0xff]  ;;  %v3451_v13 = vld [vmem:[%s3410_s26 + $0x51] sm:$0xff]  ;;  %v3454_v14 = vld [vmem:[%s3410_s26 + $0x61] sm:$0xff]  ;;  %s3871_s4 = scalar_lea.hbm %s3924_s2, %s2607_s29  ;;  %s3203_s13 = sshll.u32 %s3295_s12, 4  ;;  %s3204_s13 = int_to_ptr.vmem [resolvable:$false] %s3203_s13 }
  0x21   : > { %2894 = vmatpush3.msk.msra.mxu0 %vm243_vm0, %v2483_v2  ;;  %2768 = vmatprep.mubr.msk.f32.mxu1 %vm194_vm1, %v2433_v5  ;;  %v3467_v15 = vld [vmem:[%s3410_s26 + $0x69] sm:$0xff]  ;;  %v3470_v16 = vld [vmem:[%s3410_s26 + $0x1a] sm:$0xff]  ;;  %v3487_v19 = vld [vmem:[%s3410_s26 + $0x32] sm:$0xff]  ;;  %s3205_s7 = scalar_lea.vmem %s3204_s13, 256 }
  0x22   : > { %2872 = vmatprep.mubr.msk.f32.mxu0 %vm194_vm1, %v3419_v8  ;;  %2919 = vmatprep.subr.msk.mxu0 %vm243_vm0, %v2519_v9  ;;  %v3481_v17 = vld [vmem:[%s3410_s26 + $0x22] sm:$0xff]  ;;  %v3484_v18 = vld [vmem:[%s3410_s26 + $0x79] sm:$0xff]  ;;  %v3510_v23 = vld [vmem:[%s3410_s26 + $0x91] sm:$0xff] }
  0x23   : > { %2790 = vmatpush3.msk.msra.mxu1 %vm243_vm0, %v175_v3  ;;  %v3502_v21 = vld [vmem:[%s3410_s26 + $0x81] sm:$0xff]  ;;  %v3513_v24 = vld [vmem:[%s3410_s26 + $0x4a] sm:$0xff]  ;;  %v3526_v25 = vld [vmem:[%s3410_s26 + $0x99] sm:$0xff] }
  0x24   : > { %2769 = vmatmul.mubr.msk.f32.gmra.mrb[2].mxu1 %vm194_vm1, %v2434_v7  ;;  %2873 = vmatmul.mubr.msk.f32.gmra.mrb[2].mxu0 %vm194_vm1, %v3429_v10  ;;  %v3505_v22 = vld [vmem:[%s3410_s26 + $0x3a] sm:$0xff]  ;;  %v3529_v26 = vld [vmem:[%s3410_s26 + $0x52] sm:$0xff]  ;;  %v3532_v27 = vld [vmem:[%s3410_s26 + $0xa9] sm:$0xff] }
  0x25   : > { %2771 = vmatprep.mubr.msk.f32.mxu1 %vm194_vm1, %v3419_v8  ;;  %2875 = vmatprep.mubr.msk.f32.mxu0 %vm194_vm1, %v3434_v11  ;;  %v3535_v28 = vld [vmem:[%s3410_s26 + $0x62] sm:$0xff]  ;;  %v3546_v29 = vld [vmem:[%s3410_s26 + $0xb1] sm:$0xff]  ;;  %v3553_v32 = vld [vmem:[%s3410_s26 + $0x7a] sm:$0xff] }
  0x26   : > { %2815 = vmatprep.subr.msk.mxu1 %vm243_vm0, %v3441_v12  ;;  %v3549_v30 = vld [vmem:[%s3410_s26 + $0x6a] sm:$0xff]  ;;  %v159_v31 = vld [vmem:[%s3410_s26] sm:$0xff]  ;;  %v3567_v35 = vld [vmem:[%s3410_s26 + $0x18] sm:$0xff] }
  0x27   : > { %v160_v33 = vld [vmem:[%s3410_s26 + $0x8] sm:$0xff]  ;;  %v3570_v36 = vld [vmem:[%s3410_s26 + $0x92] sm:$0xff]  ;;  %v3583_v38 = vld [vmem:[%s3410_s26 + $0x20] sm:$0xff] }
  0x28   : > { %2772 = vmatmul.mubr.msk.f32.gmra.mrb[4].mxu1 %vm194_vm1, %v3429_v10  ;;  %2876 = vmatmul.mubr.msk.f32.gmra.mrb[4].mxu0 %vm194_vm1, %v3451_v13  ;;  %v3564_v34 = vld [vmem:[%s3410_s26 + $0x82] sm:$0xff]  ;;  %v3586_v39 = vld [vmem:[%s3410_s26 + $0x9a] sm:$0xff]  ;;  %v3589_v40 = vld [vmem:[%s3410_s26 + $0x30] sm:$0xff] }
  0x29   : > { %2774 = vmatprep.mubr.msk.f32.mxu1 %vm194_vm1, %v3434_v11  ;;  %2878 = vmatprep.mubr.msk.f32.mxu0 %vm194_vm1, %v3454_v14  ;;  %v3592_v41 = vld [vmem:[%s3410_s26 + $0xaa] sm:$0xff]  ;;  %v3606_v42 = vld [vmem:[%s3410_s26 + $0x38] sm:$0xff]  ;;  %v3615_v45 = vld [vmem:[%s3410_s26 + $0xc2] sm:$0xff] }
  0x2a   : > { %v3609_v43 = vld [vmem:[%s3410_s26 + $0xb2] sm:$0xff]  ;;  %v3612_v44 = vld [vmem:[%s3410_s26 + $0x48] sm:$0xff]  ;;  %v3632_v48 = vld [vmem:[%s3410_s26 + $0x60] sm:$0xff] }
  0x2b   : > { %v3626_v46 = vld [vmem:[%s3410_s26 + $0x50] sm:$0xff]  ;;  %v3643_v49 = vld [vmem:[%s3410_s26 + $0x68] sm:$0xff]  ;;  %v3646_v50 = vld [vmem:[%s3410_s26 + $0x78] sm:$0xff] }
  0x2c   : > { %2775 = vmatmul.mubr.msk.f32.gmra.mrb[6].mxu1 %vm194_vm1, %v3451_v13  ;;  %2879 = vmatmul.mubr.msk.f32.gmra.mrb[6].mxu0 %vm194_vm1, %v3467_v15  ;;  %v3629_v47 = vld [vmem:[%s3410_s26 + $0xca] sm:$0xff]  ;;  %v3660_v52 = vld [vmem:[%s3410_s26 + $0x80] sm:$0xff]  ;;  %v3677_v54 = vld [vmem:[%s3410_s26 + $0x98] sm:$0xff] }
  0x2d   : > { %2777 = vmatprep.mubr.msk.f32.mxu1 %vm194_vm1, %v3454_v14  ;;  %2895 = vmatprep.mubr.msk.f32.mxu0 %vm194_vm1, %v3470_v16  ;;  %v3665_v53 = vld [vmem:[%s3410_s26 + $0x90] sm:$0xff]  ;;  %v3680_v55 = vld [vmem:[%s3410_s26 + $0xa8] sm:$0xff]  ;;  %v3710_v59 = vld [vmem:[%s3410_s26 + $0xc0] sm:$0xff] }
  0x2e   : > { %v3691_v56 = vld [vmem:[%s3410_s26 + $0xb0] sm:$0xff]  ;;  %v588_v57 = vld [vmem:[%s3410_s26 + $0x2] sm:$0xff]  ;;  %v2517_v61 = vld [vmem:[%s3410_s26 + $0xd8] sm:$0xff] }
  0x2f   : > { %v589_v58 = vld [vmem:[%s3410_s26 + $0xa] sm:$0xff]  ;;  %v2518_v62 = vld [vmem:[%s3410_s26 + $0xe0] sm:$0xff] }
  0x30   : > { %2778 = vmatmul.mubr.msk.f32.gmra.mrb[8].mxu1 %vm194_vm1, %v3467_v15  ;;  %2896 = vmatmul.mubr.msk.f32.vlgmr.msra.gmra.mrb[0].mxu0 %vm194_vm1, %v3481_v17  ;;  %v2516_v60 = vld [vmem:[%s3410_s26 + $0xc8] sm:$0xff]  ;;  %v2551_v2 = vld [vmem:[%s3410_s26 + $0xd9] sm:$0xff] }
  0x31   : > { %2920 = vmatpush3.msk.msra.mxu0 %vm243_vm0, %v2519_v9  ;;  %2780 = vmatprep.mubr.msk.f32.mxu1 %vm194_vm1, %v3484_v18  ;;  %v2549_v63 = vld [vmem:[%s3410_s26 + $0xc1] sm:$0xff]  ;;  %v2550_v1 = vld [vmem:[%s3410_s26 + $0xc9] sm:$0xff] }
  0x32   : > { %2898 = vmatprep.mubr.msk.f32.mxu0 %vm194_vm1, %v3487_v19  ;;  %2945 = vmatprep.subr.msk.mxu0 %vm243_vm0, %v3492_v20  ;;  %v2585_v3 = vld [vmem:[%s3410_s26 + $0xda] sm:$0xff]  ;;  %v2586_v4 = vld [vmem:[%s3410_s26 + $0xe2] sm:$0xff] }
  0x34   : > { %2781 = vmatmul.mubr.msk.f32.gmra.mrb[10].mxu1 %vm194_vm1, %v3502_v21  ;;  %2899 = vmatmul.mubr.msk.f32.gmra.mrb[2].mxu0 %vm194_vm1, %v3505_v22 }
  0x35   : > { %2783 = vmatprep.mubr.msk.f32.mxu1 %vm194_vm1, %v3510_v23  ;;  %2901 = vmatprep.mubr.msk.f32.mxu0 %vm194_vm1, %v3513_v24 }
  0x38   : > { %2784 = vmatmul.mubr.msk.f32.gmra.mrb[12].mxu1 %vm194_vm1, %v3526_v25  ;;  %2902 = vmatmul.mubr.msk.f32.gmra.mrb[4].mxu0 %vm194_vm1, %v3529_v26 }
  0x39   : > { %2786 = vmatprep.mubr.msk.f32.mxu1 %vm194_vm1, %v3532_v27  ;;  %2904 = vmatprep.mubr.msk.f32.mxu0 %vm194_vm1, %v3535_v28 }
  0x3c   : > { %2787 = vmatmul.mubr.msk.f32.gmra.mrb[14].mxu1 %vm194_vm1, %v3546_v29  ;;  %2905 = vmatmul.mubr.msk.f32.gmra.mrb[6].mxu0 %vm194_vm1, %v3549_v30 }
  0x3d   : > { %2791 = vmatprep.mubr.msk.f32.mxu1 %vm194_vm1, %v159_v31  ;;  %2907 = vmatprep.mubr.msk.f32.mxu0 %vm194_vm1, %v3553_v32 }
  0x40   : > { %2792 = vmatmul.mubr.msk.f32.vlgmr.msra.gmra.mrb[0].mxu1 %vm194_vm1, %v160_v33  ;;  %2908 = vmatmul.mubr.msk.f32.gmra.mrb[8].mxu0 %vm194_vm1, %v3564_v34 }
  0x41   : > { %2794 = vmatprep.mubr.msk.f32.mxu1 %vm194_vm1, %v3567_v35  ;;  %2910 = vmatprep.mubr.msk.f32.mxu0 %vm194_vm1, %v3570_v36 }
  0x42   : > { %2816 = vmatpush3.msk.msra.mxu1 %vm243_vm0, %v3441_v12 }
  0x43   : > { %2841 = vmatprep.subr.msk.mxu1 %vm243_vm0, %v2415_v37 }
  0x44   : > { %2795 = vmatmul.mubr.msk.f32.gmra.mrb[2].mxu1 %vm194_vm1, %v3583_v38  ;;  %2911 = vmatmul.mubr.msk.f32.gmra.mrb[10].mxu0 %vm194_vm1, %v3586_v39 }
  0x45   : > { %2797 = vmatprep.mubr.msk.f32.mxu1 %vm194_vm1, %v3589_v40  ;;  %2913 = vmatprep.mubr.msk.f32.mxu0 %vm194_vm1, %v3592_v41 }
  0x48   : > { %2798 = vmatmul.mubr.msk.f32.gmra.mrb[4].mxu1 %vm194_vm1, %v3606_v42  ;;  %2914 = vmatmul.mubr.msk.f32.gmra.mrb[12].mxu0 %vm194_vm1, %v3609_v43 }
  0x49   : > { %2800 = vmatprep.mubr.msk.f32.mxu1 %vm194_vm1, %v3612_v44  ;;  %2916 = vmatprep.mubr.msk.f32.mxu0 %vm194_vm1, %v3615_v45 }
  0x4c   : > { %2801 = vmatmul.mubr.msk.f32.gmra.mrb[6].mxu1 %vm194_vm1, %v3626_v46  ;;  %2917 = vmatmul.mubr.msk.f32.gmra.mrb[14].mxu0 %vm194_vm1, %v3629_v47 }
  0x4d   : > { %2803 = vmatprep.mubr.msk.f32.mxu1 %vm194_vm1, %v3632_v48  ;;  %2921 = vmatprep.mubr.msk.f32.mxu0 %vm194_vm1, %v3589_v40 }
  0x50   : > { %2804 = vmatmul.mubr.msk.f32.gmra.mrb[8].mxu1 %vm194_vm1, %v3643_v49  ;;  %2922 = vmatmul.mubr.msk.f32.vlgmr.msra.gmra.mrb[0].mxu0 %vm194_vm1, %v3606_v42 }
  0x51   : > { %2946 = vmatpush3.msk.msra.mxu0 %vm243_vm0, %v3492_v20  ;;  %2806 = vmatprep.mubr.msk.f32.mxu1 %vm194_vm1, %v3646_v50 }
  0x52   : > { %2924 = vmatprep.mubr.msk.f32.mxu0 %vm194_vm1, %v3612_v44  ;;  %2971 = vmatprep.subr.msk.mxu0 %vm243_vm0, %v2587_v51 }
  0x54   : > { %2807 = vmatmul.mubr.msk.f32.gmra.mrb[10].mxu1 %vm194_vm1, %v3660_v52  ;;  %2925 = vmatmul.mubr.msk.f32.gmra.mrb[2].mxu0 %vm194_vm1, %v3626_v46 }
  0x55   : > { %2809 = vmatprep.mubr.msk.f32.mxu1 %vm194_vm1, %v3665_v53  ;;  %2927 = vmatprep.mubr.msk.f32.mxu0 %vm194_vm1, %v3632_v48 }
  0x58   : > { %2810 = vmatmul.mubr.msk.f32.gmra.mrb[12].mxu1 %vm194_vm1, %v3677_v54  ;;  %2928 = vmatmul.mubr.msk.f32.gmra.mrb[4].mxu0 %vm194_vm1, %v3643_v49 }
  0x59   : > { %2812 = vmatprep.mubr.msk.f32.mxu1 %vm194_vm1, %v3680_v55  ;;  %2930 = vmatprep.mubr.msk.f32.mxu0 %vm194_vm1, %v3646_v50 }
  0x5c   : > { %2813 = vmatmul.mubr.msk.f32.gmra.mrb[14].mxu1 %vm194_vm1, %v3691_v56  ;;  %2931 = vmatmul.mubr.msk.f32.gmra.mrb[6].mxu0 %vm194_vm1, %v3660_v52 }
  0x5d   : > { %2817 = vmatprep.mubr.msk.f32.mxu1 %vm194_vm1, %v588_v57  ;;  %2933 = vmatprep.mubr.msk.f32.mxu0 %vm194_vm1, %v3665_v53 }
  0x60   : > { %2818 = vmatmul.mubr.msk.f32.vlgmr.msra.gmra.mrb[0].mxu1 %vm194_vm1, %v589_v58  ;;  %2934 = vmatmul.mubr.msk.f32.gmra.mrb[8].mxu0 %vm194_vm1, %v3677_v54 }
  0x61   : > { %2820 = vmatprep.mubr.msk.f32.mxu1 %vm194_vm1, %v3470_v16  ;;  %2936 = vmatprep.mubr.msk.f32.mxu0 %vm194_vm1, %v3680_v55 }
  0x62   : > { %2842 = vmatpush3.msk.msra.mxu1 %vm243_vm0, %v2415_v37 }
  0x63   : > { %2997 = vmatprep.subr.msk.mxu1 %vm243_vm0, %v3385_v0 }
  0x64   : > { %2821 = vmatmul.mubr.msk.f32.gmra.mrb[2].mxu1 %vm194_vm1, %v3481_v17  ;;  %2937 = vmatmul.mubr.msk.f32.gmra.mrb[10].mxu0 %vm194_vm1, %v3691_v56 }
  0x65   : > { %2823 = vmatprep.mubr.msk.f32.mxu1 %vm194_vm1, %v3487_v19  ;;  %2939 = vmatprep.mubr.msk.f32.mxu0 %vm194_vm1, %v3710_v59 }
  0x68   : > { %2824 = vmatmul.mubr.msk.f32.gmra.mrb[4].mxu1 %vm194_vm1, %v3505_v22  ;;  %2940 = vmatmul.mubr.msk.f32.gmra.mrb[12].mxu0 %vm194_vm1, %v2516_v60 }
  0x69   : > { %2826 = vmatprep.mubr.msk.f32.mxu1 %vm194_vm1, %v3513_v24  ;;  %2942 = vmatprep.mubr.msk.f32.mxu0 %vm194_vm1, %v2517_v61 }
  0x6c   : > { %2827 = vmatmul.mubr.msk.f32.gmra.mrb[6].mxu1 %vm194_vm1, %v3529_v26  ;;  %2943 = vmatmul.mubr.msk.f32.gmra.mrb[14].mxu0 %vm194_vm1, %v2518_v62 }
  0x6d   : > { %2829 = vmatprep.mubr.msk.f32.mxu1 %vm194_vm1, %v3535_v28  ;;  %2947 = vmatprep.mubr.msk.f32.mxu0 %vm194_vm1, %v3419_v8 }
  0x70   : > { %2830 = vmatmul.mubr.msk.f32.gmra.mrb[8].mxu1 %vm194_vm1, %v3549_v30  ;;  %2948 = vmatmul.mubr.msk.f32.vlgmr.msra.gmra.mrb[0].mxu0 %vm194_vm1, %v3429_v10 }
  0x71   : > { %2972 = vmatpush3.msk.msra.mxu0 %vm243_vm0, %v2587_v51  ;;  %2832 = vmatprep.mubr.msk.f32.mxu1 %vm194_vm1, %v3553_v32 }
  0x72   : > { %2950 = vmatprep.mubr.msk.f32.mxu0 %vm194_vm1, %v3434_v11 }
  0x74   : > { %2833 = vmatmul.mubr.msk.f32.gmra.mrb[10].mxu1 %vm194_vm1, %v3564_v34  ;;  %2951 = vmatmul.mubr.msk.f32.gmra.mrb[2].mxu0 %vm194_vm1, %v3451_v13 }
  0x75   : > { %2835 = vmatprep.mubr.msk.f32.mxu1 %vm194_vm1, %v3570_v36  ;;  %2953 = vmatprep.mubr.msk.f32.mxu0 %vm194_vm1, %v3454_v14 }
  0x78   : > { %2836 = vmatmul.mubr.msk.f32.gmra.mrb[12].mxu1 %vm194_vm1, %v3586_v39  ;;  %2954 = vmatmul.mubr.msk.f32.gmra.mrb[4].mxu0 %vm194_vm1, %v3467_v15 }
  0x79   : > { %2838 = vmatprep.mubr.msk.f32.mxu1 %vm194_vm1, %v3592_v41  ;;  %2956 = vmatprep.mubr.msk.f32.mxu0 %vm194_vm1, %v3484_v18 }
  0x7c   : > { %2839 = vmatmul.mubr.msk.f32.gmra.mrb[14].mxu1 %vm194_vm1, %v3609_v43  ;;  %2957 = vmatmul.mubr.msk.f32.gmra.mrb[6].mxu0 %vm194_vm1, %v3502_v21 }
  0x7d   : > { %2843 = vmatprep.mubr.msk.f32.mxu1 %vm194_vm1, %v3567_v35  ;;  %2959 = vmatprep.mubr.msk.f32.mxu0 %vm194_vm1, %v3510_v23 }
  0x80   : > { %2844 = vmatmul.mubr.msk.f32.vlgmr.msra.gmra.mrb[0].mxu1 %vm194_vm1, %v3583_v38  ;;  %2960 = vmatmul.mubr.msk.f32.gmra.mrb[8].mxu0 %vm194_vm1, %v3526_v25 }
  0x81   : > { %2846 = vmatprep.mubr.msk.f32.mxu1 %vm194_vm1, %v3589_v40  ;;  %2962 = vmatprep.mubr.msk.f32.mxu0 %vm194_vm1, %v3532_v27 }
  0x82   : > { %2998 = vmatpush3.msk.msra.mxu1 %vm243_vm0, %v3385_v0  ;;  %v2552_v0 = vld [vmem:[%s3410_s26 + $0xe1] sm:$0xff]  ;;  %s150_s26 = scalar_lea.vmem [#allocation2], %s2340_s21 }
  0x83   : > { %s2253_s28 = sshll.u32 %s150_s26, 4  ;;  %s3866_s28 = int_to_ptr.vmem [resolvable:$true] %s2253_s28 }
  0x84   : > { %2847 = vmatmul.mubr.msk.f32.gmra.mrb[2].mxu1 %vm194_vm1, %v3606_v42  ;;  %2963 = vmatmul.mubr.msk.f32.gmra.mrb[10].mxu0 %vm194_vm1, %v3546_v29  ;;  %s3199_s6 = scalar_lea.vmem %s3866_s28, 128  ;;  %p3206_p2 = scmp.lt.s32.totalorder %s3866_s28, %s3204_s13 }
  0x85   : > { %2849 = vmatprep.mubr.msk.f32.mxu1 %vm194_vm1, %v3612_v44  ;;  %2965 = vmatprep.mubr.msk.f32.mxu0 %vm194_vm1, %v2549_v63  ;;  %p3200_p13 = scmp.ne.s32.totalorder %s3866_s28, %s3199_s6  ;;  %p3207_p4 = scmp.lt.s32.totalorder %s3205_s7, %s3199_s6 }
  0x87   : > { %p3201_p0 = pnand %p3200_p13, %p3362_p3  ;;  %p3208_p5 = por %p3207_p4, %p3206_p2 }
  0x88   : > { %2850 = vmatmul.mubr.msk.f32.gmra.mrb[4].mxu1 %vm194_vm1, %v3626_v46  ;;  %2966 = vmatmul.mubr.msk.f32.gmra.mrb[12].mxu0 %vm194_vm1, %v2550_v1 }
  0x89   : > { %2852 = vmatprep.mubr.msk.f32.mxu1 %vm194_vm1, %v3632_v48  ;;  %2968 = vmatprep.mubr.msk.f32.mxu0 %vm194_vm1, %v2551_v2  ;;  %p3202_p1 = pneg %p3201_p0 }
  0x8b   : > { %p3209_p6 = pnand %p3208_p5, %p3202_p1 }
  0x8c   : > { %2853 = vmatmul.mubr.msk.f32.gmra.mrb[6].mxu1 %vm194_vm1, %v3643_v49  ;;  %2969 = vmatmul.mubr.msk.f32.gmra.mrb[14].mxu0 %vm194_vm1, %v2552_v0 }
  0x8d   : > { %2855 = vmatprep.mubr.msk.f32.mxu1 %vm194_vm1, %v3646_v50  ;;  %2973 = vmatprep.mubr.msk.f32.mxu0 %vm194_vm1, %v3487_v19 }
  0x90   : > { %2856 = vmatmul.mubr.msk.f32.gmra.mrb[8].mxu1 %vm194_vm1, %v3660_v52  ;;  %2974 = vmatmul.mubr.msk.f32.vlgmr.msra.gmra.mrb[0].mxu0 %vm194_vm1, %v3505_v22 }
  0x91   : > { %2858 = vmatprep.mubr.msk.f32.mxu1 %vm194_vm1, %v3665_v53  ;;  %2976 = vmatprep.mubr.msk.f32.mxu0 %vm194_vm1, %v3513_v24 }
  0x94   : > { %2859 = vmatmul.mubr.msk.f32.gmra.mrb[10].mxu1 %vm194_vm1, %v3677_v54  ;;  %2977 = vmatmul.mubr.msk.f32.gmra.mrb[2].mxu0 %vm194_vm1, %v3529_v26 }
  0x95   : > { %2861 = vmatprep.mubr.msk.f32.mxu1 %vm194_vm1, %v3680_v55  ;;  %2979 = vmatprep.mubr.msk.f32.mxu0 %vm194_vm1, %v3535_v28 }
  0x98   : > { %2862 = vmatmul.mubr.msk.f32.gmra.mrb[12].mxu1 %vm194_vm1, %v3691_v56  ;;  %2980 = vmatmul.mubr.msk.f32.gmra.mrb[4].mxu0 %vm194_vm1, %v3549_v30 }
  0x99   : > { %2864 = vmatprep.mubr.msk.f32.mxu1 %vm194_vm1, %v3710_v59  ;;  %2982 = vmatprep.mubr.msk.f32.mxu0 %vm194_vm1, %v3553_v32 }
  0x9c   : > { %2865 = vmatmul.mubr.msk.f32.gmra.mrb[14].mxu1 %vm194_vm1, %v2516_v60  ;;  %2983 = vmatmul.mubr.msk.f32.gmra.mrb[6].mxu0 %vm194_vm1, %v3564_v34 }
  0x9d   : > { %2881 = vmatprep.mubr.msk.f32.mxu1 %vm194_vm1, %v3484_v18  ;;  %2985 = vmatprep.mubr.msk.f32.mxu0 %vm194_vm1, %v3570_v36 }
  0xa0   : > { %2882 = vmatmul.mubr.msk.f32.vlgmr.msra.gmra.mrb[8].mxu1 %vm194_vm1, %v3502_v21  ;;  %2986 = vmatmul.mubr.msk.f32.gmra.mrb[8].mxu0 %vm194_vm1, %v3586_v39 }
  0xa1   : > { %2884 = vmatprep.mubr.msk.f32.mxu1 %vm194_vm1, %v3510_v23  ;;  %2988 = vmatprep.mubr.msk.f32.mxu0 %vm194_vm1, %v3592_v41 }
  0xa4   : > { %2885 = vmatmul.mubr.msk.f32.gmra.mrb[10].mxu1 %vm194_vm1, %v3526_v25  ;;  %2989 = vmatmul.mubr.msk.f32.gmra.mrb[10].mxu0 %vm194_vm1, %v3609_v43 }
  0xa5   : > { %2887 = vmatprep.mubr.msk.f32.mxu1 %vm194_vm1, %v3532_v27  ;;  %2991 = vmatprep.mubr.msk.f32.mxu0 %vm194_vm1, %v3615_v45 }
  0xa8   : > { %2888 = vmatmul.mubr.msk.f32.gmra.mrb[12].mxu1 %vm194_vm1, %v3546_v29  ;;  %2992 = vmatmul.mubr.msk.f32.gmra.mrb[12].mxu0 %vm194_vm1, %v3629_v47 }
  0xa9   : > { %2890 = vmatprep.mubr.msk.f32.mxu1 %vm194_vm1, %v2549_v63  ;;  %2994 = vmatprep.mubr.msk.f32.mxu0 %vm194_vm1, %v2585_v3 }
  0xac   : > { %2891 = vmatmul.mubr.msk.f32.gmra.mrb[14].mxu1 %vm194_vm1, %v2550_v1  ;;  %2995 = vmatmul.mubr.msk.f32.gmra.mrb[14].mxu0 %vm194_vm1, %v2586_v4 }
 0x153   : > { %v2845_v5 = vpop.f32.mrb[0].mxu1 }
 0x154   : > { %v956_v6 = vpop.f32.mrb[1].mxu1 }
 0x157   : > { %v2848_v7 = vpop.f32.mrb[2].mxu1 }
 0x158   : > { %v966_v8 = vpop.f32.mrb[3].mxu1 }
 0x15b   : > { %v2851_v9 = vpop.f32.mrb[4].mxu1 }
 0x15c   : > { %v976_v10 = vpop.f32.mrb[5].mxu1 }
 0x15f   : > { %v2854_v11 = vpop.f32.mrb[6].mxu1 }
 0x160   : > { %v986_v12 = vpop.f32.mrb[7].mxu1 }
 0x163   : > { %v2975_v13 = vpop.f32.mrb[0].mxu0 }
 0x164   : > { %v2999_v14 = vadd.f32 %v2975_v13, %v2845_v5  ;;  %v2109_v15 = vpop.f32.mrb[1].mxu0 }
 0x165   : > { %v3000_v16 = vadd.f32 %v2109_v15, %v956_v6 }
 0x167   : > { %v2978_v17 = vpop.f32.mrb[2].mxu0  ;;  %2204 = vxpose.xlu0.b32.start [1/16] (narrow) %v3000_v16, 8 }
 0x168   : > { %v3001_v18 = vadd.f32 %v2978_v17, %v2848_v7  ;;  %v2119_v19 = vpop.f32.mrb[3].mxu0 }
 0x169   : > { %v3002_v20 = vadd.f32 %v2119_v19, %v966_v8 }
 0x16b   : > { %v2981_v21 = vpop.f32.mrb[4].mxu0  ;;  %2205 = vxpose.xlu0.b32.cont [2/16] (narrow) %v2999_v14, 8 }
 0x16c   : > { %v3003_v22 = vadd.f32 %v2981_v21, %v2851_v9  ;;  %v2129_v23 = vpop.f32.mrb[5].mxu0 }
 0x16d   : > { %v3004_v24 = vadd.f32 %v2129_v23, %v976_v10 }
 0x16f   : > { %v2984_v25 = vpop.f32.mrb[6].mxu0  ;;  %2206 = vxpose.xlu0.b32.cont [3/16] (narrow) %v3002_v20, 8 }
 0x170   : > { %v3005_v26 = vadd.f32 %v2984_v25, %v2854_v11  ;;  %v2139_v27 = vpop.f32.mrb[7].mxu0 }
 0x171   : > { %v3006_v28 = vadd.f32 %v2139_v27, %v986_v12 }
 0x173   : > { %v2883_v29 = vpop.f32.mrb[8].mxu1  ;;  %v2987_v30 = vpop.f32.mrb[8].mxu0  ;;  %2207 = vxpose.xlu0.b32.cont [4/16] (narrow) %v3001_v18, 8 }
 0x174   : > { %v3007_v31 = vadd.f32 %v2987_v30, %v2883_v29  ;;  %v1226_v32 = vpop.f32.mrb[9].mxu1  ;;  %v2149_v33 = vpop.f32.mrb[9].mxu0 }
 0x175   : > { %v3008_v34 = vadd.f32 %v2149_v33, %v1226_v32 }
 0x177   : > { %v2886_v35 = vpop.f32.mrb[10].mxu1  ;;  %v2990_v36 = vpop.f32.mrb[10].mxu0  ;;  %2208 = vxpose.xlu0.b32.cont [5/16] (narrow) %v3004_v24, 8 }
 0x178   : > { %v3009_v37 = vadd.f32 %v2990_v36, %v2886_v35  ;;  %v1236_v38 = vpop.f32.mrb[11].mxu1  ;;  %v2159_v39 = vpop.f32.mrb[11].mxu0 }
 0x179   : > { %v3010_v40 = vadd.f32 %v2159_v39, %v1236_v38 }
 0x17b   : > { %v2889_v41 = vpop.f32.mrb[12].mxu1  ;;  %v2993_v42 = vpop.f32.mrb[12].mxu0  ;;  %2209 = vxpose.xlu0.b32.cont [6/16] (narrow) %v3003_v22, 8 }
 0x17c   : > { %v3011_v43 = vadd.f32 %v2993_v42, %v2889_v41  ;;  %v1246_v44 = vpop.f32.mrb[13].mxu1  ;;  %v2169_v45 = vpop.f32.mrb[13].mxu0 }
 0x17d   : > { %v3012_v46 = vadd.f32 %v2169_v45, %v1246_v44 }
 0x17f   : > { %v2892_v47 = vpop.f32.mrb[14].mxu1  ;;  %v2996_v48 = vpop.f32.mrb[14].mxu0  ;;  %2210 = vxpose.xlu0.b32.cont [7/16] (narrow) %v3006_v28, 8 }
 0x180   : > { %v3013_v49 = vadd.f32 %v2996_v48, %v2892_v47  ;;  %v1256_v50 = vpop.f32.mrb[15].mxu1  ;;  %v2179_v51 = vpop.f32.mrb[15].mxu0 }
 0x181   : > { %v3014_v52 = vadd.f32 %v2179_v51, %v1256_v50 }
 0x183   : > { %2211 = vxpose.xlu0.b32.cont [8/16] (narrow) %v3005_v26, 8 }
 0x187   : > { %2212 = vxpose.xlu0.b32.cont [9/16] (narrow) %v3008_v34, 8 }
 0x18b   : > { %2213 = vxpose.xlu0.b32.cont [10/16] (narrow) %v3007_v31, 8 }
 0x18f   : > { %2214 = vxpose.xlu0.b32.cont [11/16] (narrow) %v3010_v40, 8 }
 0x193   : > { %2215 = vxpose.xlu0.b32.cont [12/16] (narrow) %v3009_v37, 8 }
 0x197   : > { %2216 = vxpose.xlu0.b32.cont [13/16] (narrow) %v3012_v46, 8 }
 0x19b   : > { %2217 = vxpose.xlu0.b32.cont [14/16] (narrow) %v3011_v43, 8 }
 0x19f   : > { %2218 = vxpose.xlu0.b32.cont [15/16] (narrow) %v3014_v52, 8 }
 0x1a3   : > { %2219 = vxpose.xlu0.b32.end [16/16] (narrow) %v3013_v49, 8 }
 0x1e7   : > { %v2220_v53 = vpop.trf.xlu0 }
 0x1e8   : > { %2236 = vst [vmem:[%s150_s26] sm:$0xff] %v2220_v53 }
 0x1e9   : > { %3212 = shalt.err (!%p3209_p6)
}
 0x1ea   : > { %s3213_s8 = scalar_lea.hbm %s3871_s4, 128  ;;  %s3217_s21 = scalar_lea.hbm %s3924_s2, 512 }
 0x1eb   : > { %p3214_p7 = scmp.ne.s32.totalorder %s3871_s4, %s3213_s8  ;;  %p3218_p11 = scmp.lt.u32.totalorder %s3871_s4, %s3924_s2 }
 0x1ec   : > { %p3219_p12 = scmp.lt.u32.totalorder %s3217_s21, %s3213_s8  ;;  %p3221_p0 = scmp.lt.u32.totalorder %s3213_s8, %s3871_s4 }
 0x1ed   : > { %p3215_p9 = pnand %p3214_p7, %p3362_p3 }
 0x1ee   : > { %p3220_p13 = por %p3219_p12, %p3218_p11 }
 0x1ef   : > { %p3216_p10 = pneg %p3215_p9 }
 0x1f0   : > { %p3222_p1 = por %p3221_p0, %p3220_p13 }
 0x1f2   : > { %p3223_p2 = pnand %p3222_p1, %p3216_p10 }
 0x1f4   : > { %3226 = shalt.err (!%p3223_p2)
}
 0x1f5   : > { %3128 = dma.vmem_to_hbm [thread:$0]  (%p3362_p3), %s3866_s28, 128, %s3871_s4, %s2238_s5  }
 0x1f6 PF: > { %p3134_p4 = scmp.ge.s32.totalorder %s3293_s16, 2  ;;  %s2265_s26 = sand.u32 1, %s3265_s9  }
 0x1f7   : > { %s2266_s29 = scalar_lea.sflag [#allocation3], %s2265_s26 }
 0x1f8   : > { %p3131_p5 = pnand %p3134_p4, %p3371_p8 }
 0x1fa   : > { %3260 = dma.done.wait (!%p3131_p5), %s2266_s29, 128  }
 0x1fb   : > { %3262 = vsyncadd (!%p3131_p5), %s2266_s29, 4294967168  ;;  %s15_s16 = sadd.s32 1, %s3293_s16   ;;  %s3927_s9 = smov %s3269_s10 }
 0x1fc   : > { %p12_p6 = scmp.ge.s32.totalorder %s15_s16, 6   ;;  %s3928_s10 = smov %s3273_s11 }
 0x1fd   : > { %s3929_s11 = smov %s3380_s27  ;;  %s3930_s12 = smov %s3285_s14 }
 0x1fe   : > { %s3931_s13 = smov %s3289_s15  ;;  %s3932_s14 = smov %s3935_s19 }
 0x1ff   : > { %s3933_s15 = smov %s3939_s20  ;;  %14 = sbr.rel (!%p12_p6) target bundleno = 5 (0x5), region = 74 }
 0x206   :  { %2271 = vsyncpa [#allocation3], 1 }
 0x207   :  { %2273 = vsyncpa [#allocation3 + $0x1], 1 }

</bundles_post_ra>
